<compile_context>
chip_gen: v5e
topology: v5e:2x2
jax: 0.10.0
libtpu: 0.0.40
codegen_flags: <defaults>
</compile_context>

<pallas_src>
import jax
import jax.numpy as jnp
from jax.experimental import pallas as pl
from jax.experimental.pallas import tpu as pltpu


def _mlp_kernel(x_ref,
                w1_ref, b1_ref,
                w2_ref, b2_ref,
                w3_ref, b3_ref,
                w4_ref, b4_ref,
                o_ref):
    # Hoist bias loads once per tile.
    b1 = b1_ref[...]
    b2 = b2_ref[...]
    b3 = b3_ref[...]
    b4 = b4_ref[...]

    # x arrives f32; cast to bf16 for the MXU here (under the pipeline),
    # instead of a separate XLA cast pass in the wrapper.
    x = x_ref[...].astype(jnp.bfloat16)

    # Layer 1: bf16 MXU matmul, f32 accumulation, f32 elementwise.
    h = jnp.dot(x, w1_ref[...], preferred_element_type=jnp.float32)
    h = jnp.maximum(h + b1, 0.0)

    # Layer 2.
    h = jnp.dot(h.astype(w2_ref.dtype), w2_ref[...],
                preferred_element_type=jnp.float32)
    h = jnp.maximum(h + b2, 0.0)

    # Layer 3.
    h = jnp.dot(h.astype(w3_ref.dtype), w3_ref[...],
                preferred_element_type=jnp.float32)
    h = jnp.maximum(h + b3, 0.0)

    # Layer 4 + sigmoid: exp on the EUP; exact f32 divide (cheap at out_dim
    # width) keeps the output close to jax.nn.sigmoid.
    z = jnp.dot(h.astype(w4_ref.dtype), w4_ref[...],
                preferred_element_type=jnp.float32)
    z = z + b4
    o_ref[...] = (1.0 / (1.0 + jnp.exp(-z))).astype(o_ref.dtype)


def prepare_params(params):
    """One-time conversion: weights -> bf16 (MXU inputs), biases -> f32."""
    prepped = {}
    for li in range(1, 5):
        prepped[f"w{li}"] = params[f"w{li}"].astype(jnp.bfloat16)
        prepped[f"b{li}"] = params[f"b{li}"].astype(jnp.float32)
    return prepped


def _pick_batch_tile(batch):
    # Largest tile that still leaves >= 2 grid steps (so dimension_semantics
    # "parallel" can shard the batch axis over v7x's 2 TensorCores) while
    # amortizing ~0.35us per-grid-step overhead. Tiles are multiples of 8
    # (sublane) unless the whole batch is smaller than 8, in which case the
    # block simply spans the full batch dim (always legal).
    if batch <= 8:
        return batch
    for tb in (8192, 4096, 2048, 1024, 512, 256, 128, 64, 32, 16, 8):
        if 2 * tb <= batch:
            return tb
    return 8


def _vmem_limit_bytes(tb, in_dim, h1, h2, h3, out_dim):
    # Weights are single-buffered bf16 residents; biases f32.
    weight_bytes = 2 * (in_dim * h1 + h1 * h2 + h2 * h3 + h3 * out_dim)
    bias_bytes = 4 * (h1 + h2 + h3 + out_dim)
    # Double-buffered f32 x / out tiles.
    io_bytes = 2 * (tb * in_dim * 4 + tb * out_dim * 4)
    # Concurrently-live intermediates: per hidden layer an f32 result plus its
    # bf16 MXU copy, the bf16 copy of x, and the f32 logits.
    act_bytes = tb * ((4 + 2) * (h1 + h2 + h3) + 2 * in_dim + 4 * out_dim)
    footprint = weight_bytes + bias_bytes + io_bytes + act_bytes
    try:
        vmem_cap = pltpu.get_tpu_info().vmem_capacity_bytes
    except Exception:
        vmem_cap = 64 << 20  # conservative (v7x per-TC physical VMEM)
    # ~25% headroom for compiler internal scratch; never below 16 MiB.
    return int(min(int(vmem_cap * 3 // 4), max(16 << 20, 2 * footprint)))


def neuralnetwork3_forward(x, params, *, batch_tile=None):
    """Fused forward pass of Neuralnetwork3 as a single Pallas kernel.

    x: [B, in_dim] float32
    params: dict with w1..w4 ([in, out], transposed vs nn.Linear) and
            b1..b4 ([1, out]); raw f32 params are converted on the fly, but
            pass prepare_params(params) to avoid re-converting every call.
    Returns [B, out_dim] float32.
    """
    B, in_dim = x.shape
    if params["w1"].dtype != jnp.bfloat16:
        params = prepare_params(params)
    w1, b1 = params["w1"], params["b1"]
    w2, b2 = params["w2"], params["b2"]
    w3, b3 = params["w3"], params["b3"]
    w4, b4 = params["w4"], params["b4"]
    h1, h2, h3, out_dim = w1.shape[1], w2.shape[1], w3.shape[1], w4.shape[1]

    tb = batch_tile if batch_tile is not None else _pick_batch_tile(B)
    grid = (pl.cdiv(B, tb),)

    flops = 2 * B * (in_dim * h1 + h1 * h2 + h2 * h3 + h3 * out_dim)
    bytes_accessed = (B * in_dim * 4 + B * out_dim * 4
                      + 2 * (w1.size + w2.size + w3.size + w4.size)
                      + 4 * (b1.size + b2.size + b3.size + b4.size))
    cost = pl.CostEstimate(flops=int(flops),
                           transcendentals=int(B * out_dim),
                           bytes_accessed=int(bytes_accessed))

    vmem_limit = _vmem_limit_bytes(tb, in_dim, h1, h2, h3, out_dim)

    def build(weight_pipeline_mode):
        def const_spec(shape):
            # Constant (0, 0) index_map: DMA'd once, stays VMEM-resident.
            return pl.BlockSpec(shape, lambda i: (0, 0),
                                pipeline_mode=weight_pipeline_mode)

        return pl.pallas_call(
            _mlp_kernel,
            out_shape=jax.ShapeDtypeStruct((B, out_dim), jnp.float32),
            grid_spec=pltpu.PrefetchScalarGridSpec(
                num_scalar_prefetch=0,
                grid=grid,
                in_specs=[
                    pl.BlockSpec((tb, in_dim), lambda i: (i, 0)),   # x tile
                    const_spec(w1.shape), const_spec(b1.shape),
                    const_spec(w2.shape), const_spec(b2.shape),
                    const_spec(w3.shape), const_spec(b3.shape),
                    const_spec(w4.shape), const_spec(b4.shape),
                ],
                out_specs=pl.BlockSpec((tb, out_dim), lambda i: (i, 0)),
            ),
            compiler_params=pltpu.CompilerParams(
                dimension_semantics=("parallel",),
                vmem_limit_bytes=vmem_limit),
            cost_estimate=cost,
        )

    args = (x.astype(jnp.float32), w1, b1, w2, b2, w3, b3, w4, b4)
    try:
        # Constant-index weight/bias blocks don't need double-buffering.
        return build(pl.Buffered(1))(*args)
    except Exception:
        # Fallback if this jax version rejects single-buffered pipeline_mode.
        return build(None)(*args)


def init_params(key, in_dim, n_hidden, out_dim):
    """PyTorch-style uniform(-1/sqrt(fan_in), 1/sqrt(fan_in)) init.

    Weights stored transposed ([in, out]) for the kernel's x @ W convention.
    """
    dims = [in_dim, 4 * n_hidden, 2 * n_hidden, n_hidden, out_dim]
    params = {}
    for li in range(4):
        fan_in, fan_out = dims[li], dims[li + 1]
        key, kw, kb = jax.random.split(key, 3)
        bound = 1.0 / (fan_in ** 0.5)
        params[f"w{li+1}"] = jax.random.uniform(
            kw, (fan_in, fan_out), jnp.float32, -bound, bound)
        params[f"b{li+1}"] = jax.random.uniform(
            kb, (1, fan_out), jnp.float32, -bound, bound)
    return params


def _reference_forward(x, params):
    h = jnp.maximum(x @ params["w1"] + params["b1"], 0.0)
    h = jnp.maximum(h @ params["w2"] + params["b2"], 0.0)
    h = jnp.maximum(h @ params["w3"] + params["b3"], 0.0)
    return jax.nn.sigmoid(h @ params["w4"] + params["b4"])


if __name__ == "__main__":
    key = jax.random.PRNGKey(0)
    key, kx, kp = jax.random.split(key, 3)

    # Small shapes consistent with the module: in_dim=16, n_hidden=32, out_dim=8
    # (hidden layer widths 128 / 64 / 32).
    batch, in_dim, n_hidden, out_dim = 8, 16, 32, 8
    x = jax.random.normal(kx, (batch, in_dim), jnp.float32)
    params = init_params(kp, in_dim, n_hidden, out_dim)

    prepped = prepare_params(params)       # one-time bf16/f32 conversion
    out = neuralnetwork3_forward(x, prepped)
    out = jax.block_until_ready(out)

    ref = _reference_forward(x, params)
    assert out.shape == (batch, out_dim)
    # bf16 MXU inputs -> loosened tolerance vs the f32 reference (sigmoid
    # output is in [0, 1], so absolute error is the right metric).
    assert jnp.allclose(out, ref, atol=2e-2, rtol=2e-2), "mismatch vs reference"

    print("KERNEL_OK")
</pallas_src>

<mosaic_0001>
module attributes {stable_mosaic.version = 11 : i64} {
  func.func @_mlp_kernel(%arg0: i32, %arg1: memref<8x16xf32, #tpu.memory_space<vmem>>, %arg2: memref<16x128xbf16, #tpu.memory_space<vmem>>, %arg3: memref<1x128xf32, #tpu.memory_space<vmem>>, %arg4: memref<128x64xbf16, #tpu.memory_space<vmem>>, %arg5: memref<1x64xf32, #tpu.memory_space<vmem>>, %arg6: memref<64x32xbf16, #tpu.memory_space<vmem>>, %arg7: memref<1x32xf32, #tpu.memory_space<vmem>>, %arg8: memref<32x8xbf16, #tpu.memory_space<vmem>>, %arg9: memref<1x8xf32, #tpu.memory_space<vmem>>, %arg10: memref<8x8xf32, #tpu.memory_space<vmem>>) attributes {dimension_semantics = [#tpu.dimension_semantics<parallel>], iteration_bounds = array<i64: 1>, scalar_prefetch = 0 : i64, scratch_operands = 0 : i64, tpu.core_type = #tpu.core_type<tc>, window_params = [{transform_indices = @transform_0, window_bounds = array<i64: 8, 16>}, {pipeline_mode = #tpu.pipeline_mode<synchronous>, transform_indices = @transform_1, window_bounds = array<i64: 16, 128>}, {pipeline_mode = #tpu.pipeline_mode<synchronous>, transform_indices = @transform_2, window_bounds = array<i64: 1, 128>}, {pipeline_mode = #tpu.pipeline_mode<synchronous>, transform_indices = @transform_3, window_bounds = array<i64: 128, 64>}, {pipeline_mode = #tpu.pipeline_mode<synchronous>, transform_indices = @transform_4, window_bounds = array<i64: 1, 64>}, {pipeline_mode = #tpu.pipeline_mode<synchronous>, transform_indices = @transform_5, window_bounds = array<i64: 64, 32>}, {pipeline_mode = #tpu.pipeline_mode<synchronous>, transform_indices = @transform_6, window_bounds = array<i64: 1, 32>}, {pipeline_mode = #tpu.pipeline_mode<synchronous>, transform_indices = @transform_7, window_bounds = array<i64: 32, 8>}, {pipeline_mode = #tpu.pipeline_mode<synchronous>, transform_indices = @transform_8, window_bounds = array<i64: 1, 8>}, {transform_indices = @transform_9, window_bounds = array<i64: 8, 8>}]} {
    %c0 = arith.constant 0 : index
    %c0_0 = arith.constant 0 : index
    %0 = vector.load %arg3[%c0, %c0_0] : memref<1x128xf32, #tpu.memory_space<vmem>>, vector<1x128xf32>
    %c0_1 = arith.constant 0 : index
    %c0_2 = arith.constant 0 : index
    %1 = vector.load %arg5[%c0_1, %c0_2] : memref<1x64xf32, #tpu.memory_space<vmem>>, vector<1x64xf32>
    %c0_3 = arith.constant 0 : index
    %c0_4 = arith.constant 0 : index
    %2 = vector.load %arg7[%c0_3, %c0_4] : memref<1x32xf32, #tpu.memory_space<vmem>>, vector<1x32xf32>
    %c0_5 = arith.constant 0 : index
    %c0_6 = arith.constant 0 : index
    %3 = vector.load %arg9[%c0_5, %c0_6] : memref<1x8xf32, #tpu.memory_space<vmem>>, vector<1x8xf32>
    %c0_7 = arith.constant 0 : index
    %c0_8 = arith.constant 0 : index
    %4 = vector.load %arg1[%c0_7, %c0_8] : memref<8x16xf32, #tpu.memory_space<vmem>>, vector<8x16xf32>
    %5 = arith.truncf %4 : vector<8x16xf32> to vector<8x16xbf16>
    %c0_9 = arith.constant 0 : index
    %c0_10 = arith.constant 0 : index
    %6 = vector.load %arg2[%c0_9, %c0_10] : memref<16x128xbf16, #tpu.memory_space<vmem>>, vector<16x128xbf16>
    %cst = arith.constant dense<0.000000e+00> : vector<8x128xf32>
    %7 = tpu.matmul %5, %6, %cst {dimension_numbers = #tpu.dot_dimension_numbers<[1], [0], [0], [1], [0, 0, 1, 1], [], []>} : vector<8x16xbf16>, vector<16x128xbf16>, vector<8x128xf32> -> vector<8x128xf32>
    %8 = vector.broadcast %0 : vector<1x128xf32> to vector<8x128xf32>
    %9 = arith.addf %7, %8 : vector<8x128xf32>
    %cst_11 = arith.constant 0.000000e+00 : f32
    %10 = vector.broadcast %cst_11 : f32 to vector<8x128xf32>
    %11 = arith.maximumf %9, %10 : vector<8x128xf32>
    %12 = arith.truncf %11 : vector<8x128xf32> to vector<8x128xbf16>
    %c0_12 = arith.constant 0 : index
    %c0_13 = arith.constant 0 : index
    %13 = vector.load %arg4[%c0_12, %c0_13] : memref<128x64xbf16, #tpu.memory_space<vmem>>, vector<128x64xbf16>
    %cst_14 = arith.constant dense<0.000000e+00> : vector<8x64xf32>
    %14 = tpu.matmul %12, %13, %cst_14 {dimension_numbers = #tpu.dot_dimension_numbers<[1], [0], [0], [1], [0, 0, 1, 1], [], []>} : vector<8x128xbf16>, vector<128x64xbf16>, vector<8x64xf32> -> vector<8x64xf32>
    %15 = vector.broadcast %1 : vector<1x64xf32> to vector<8x64xf32>
    %16 = arith.addf %14, %15 : vector<8x64xf32>
    %cst_15 = arith.constant 0.000000e+00 : f32
    %17 = vector.broadcast %cst_15 : f32 to vector<8x64xf32>
    %18 = arith.maximumf %16, %17 : vector<8x64xf32>
    %19 = arith.truncf %18 : vector<8x64xf32> to vector<8x64xbf16>
    %c0_16 = arith.constant 0 : index
    %c0_17 = arith.constant 0 : index
    %20 = vector.load %arg6[%c0_16, %c0_17] : memref<64x32xbf16, #tpu.memory_space<vmem>>, vector<64x32xbf16>
    %cst_18 = arith.constant dense<0.000000e+00> : vector<8x32xf32>
    %21 = tpu.matmul %19, %20, %cst_18 {dimension_numbers = #tpu.dot_dimension_numbers<[1], [0], [0], [1], [0, 0, 1, 1], [], []>} : vector<8x64xbf16>, vector<64x32xbf16>, vector<8x32xf32> -> vector<8x32xf32>
    %22 = vector.broadcast %2 : vector<1x32xf32> to vector<8x32xf32>
    %23 = arith.addf %21, %22 : vector<8x32xf32>
    %cst_19 = arith.constant 0.000000e+00 : f32
    %24 = vector.broadcast %cst_19 : f32 to vector<8x32xf32>
    %25 = arith.maximumf %23, %24 : vector<8x32xf32>
    %26 = arith.truncf %25 : vector<8x32xf32> to vector<8x32xbf16>
    %c0_20 = arith.constant 0 : index
    %c0_21 = arith.constant 0 : index
    %27 = vector.load %arg8[%c0_20, %c0_21] : memref<32x8xbf16, #tpu.memory_space<vmem>>, vector<32x8xbf16>
    %cst_22 = arith.constant dense<0.000000e+00> : vector<8x8xf32>
    %28 = tpu.matmul %26, %27, %cst_22 {dimension_numbers = #tpu.dot_dimension_numbers<[1], [0], [0], [1], [0, 0, 1, 1], [], []>} : vector<8x32xbf16>, vector<32x8xbf16>, vector<8x8xf32> -> vector<8x8xf32>
    %29 = vector.broadcast %3 : vector<1x8xf32> to vector<8x8xf32>
    %30 = arith.addf %28, %29 : vector<8x8xf32>
    %cst_23 = arith.constant 0.000000e+00 : f32
    %31 = vector.broadcast %cst_23 : f32 to vector<8x8xf32>
    %32 = arith.subf %31, %30 : vector<8x8xf32>
    %33 = math.exp %32 : vector<8x8xf32>
    %cst_24 = arith.constant 1.000000e+00 : f32
    %34 = vector.broadcast %cst_24 : f32 to vector<8x8xf32>
    %35 = arith.addf %34, %33 : vector<8x8xf32>
    %cst_25 = arith.constant 1.000000e+00 : f32
    %36 = vector.broadcast %cst_25 : f32 to vector<8x8xf32>
    %37 = arith.divf %36, %35 : vector<8x8xf32>
    %c0_26 = arith.constant 0 : index
    %c0_27 = arith.constant 0 : index
    %38 = vector.load %arg10[%c0_26, %c0_27] : memref<8x8xf32, #tpu.memory_space<vmem>>, vector<8x8xf32>
    tpu.vector_store %arg10[%c0_26, %c0_27], %37 {strides = array<i32>} : memref<8x8xf32, #tpu.memory_space<vmem>>, vector<8x8xf32>,
    return
  }
  func.func @transform_0(%arg0: i32) -> (i32, i32) {
    %c0_i32 = arith.constant 0 : i32
    %c0_i32_0 = arith.constant 0 : i32
    return %arg0, %c0_i32 : i32, i32
  }
  func.func @transform_1(%arg0: i32) -> (i32, i32) {
    %c0_i32 = arith.constant 0 : i32
    %c0_i32_0 = arith.constant 0 : i32
    %c0_i32_1 = arith.constant 0 : i32
    return %c0_i32, %c0_i32_0 : i32, i32
  }
  func.func @transform_2(%arg0: i32) -> (i32, i32) {
    %c0_i32 = arith.constant 0 : i32
    %c0_i32_0 = arith.constant 0 : i32
    %c0_i32_1 = arith.constant 0 : i32
    return %c0_i32, %c0_i32_0 : i32, i32
  }
  func.func @transform_3(%arg0: i32) -> (i32, i32) {
    %c0_i32 = arith.constant 0 : i32
    %c0_i32_0 = arith.constant 0 : i32
    %c0_i32_1 = arith.constant 0 : i32
    return %c0_i32, %c0_i32_0 : i32, i32
  }
  func.func @transform_4(%arg0: i32) -> (i32, i32) {
    %c0_i32 = arith.constant 0 : i32
    %c0_i32_0 = arith.constant 0 : i32
    %c0_i32_1 = arith.constant 0 : i32
    return %c0_i32, %c0_i32_0 : i32, i32
  }
  func.func @transform_5(%arg0: i32) -> (i32, i32) {
    %c0_i32 = arith.constant 0 : i32
    %c0_i32_0 = arith.constant 0 : i32
    %c0_i32_1 = arith.constant 0 : i32
    return %c0_i32, %c0_i32_0 : i32, i32
  }
  func.func @transform_6(%arg0: i32) -> (i32, i32) {
    %c0_i32 = arith.constant 0 : i32
    %c0_i32_0 = arith.constant 0 : i32
    %c0_i32_1 = arith.constant 0 : i32
    return %c0_i32, %c0_i32_0 : i32, i32
  }
  func.func @transform_7(%arg0: i32) -> (i32, i32) {
    %c0_i32 = arith.constant 0 : i32
    %c0_i32_0 = arith.constant 0 : i32
    %c0_i32_1 = arith.constant 0 : i32
    return %c0_i32, %c0_i32_0 : i32, i32
  }
  func.func @transform_8(%arg0: i32) -> (i32, i32) {
    %c0_i32 = arith.constant 0 : i32
    %c0_i32_0 = arith.constant 0 : i32
    %c0_i32_1 = arith.constant 0 : i32
    return %c0_i32, %c0_i32_0 : i32, i32
  }
  func.func @transform_9(%arg0: i32) -> (i32, i32) {
    %c0_i32 = arith.constant 0 : i32
    %c0_i32_0 = arith.constant 0 : i32
    return %arg0, %c0_i32 : i32, i32
  }
}

module attributes {stable_mosaic.version = 11 : i64} {
  func.func @_mlp_kernel(%arg0: i32, %arg1: memref<8x16xf32, #tpu.memory_space<vmem>>, %arg2: memref<16x128xbf16, #tpu.memory_space<vmem>>, %arg3: memref<1x128xf32, #tpu.memory_space<vmem>>, %arg4: memref<128x64xbf16, #tpu.memory_space<vmem>>, %arg5: memref<1x64xf32, #tpu.memory_space<vmem>>, %arg6: memref<64x32xbf16, #tpu.memory_space<vmem>>, %arg7: memref<1x32xf32, #tpu.memory_space<vmem>>, %arg8: memref<32x8xbf16, #tpu.memory_space<vmem>>, %arg9: memref<1x8xf32, #tpu.memory_space<vmem>>, %arg10: memref<8x8xf32, #tpu.memory_space<vmem>>) attributes {dimension_semantics = [#tpu.dimension_semantics<parallel>], iteration_bounds = array<i64: 1>, scalar_prefetch = 0 : i64, scratch_operands = 0 : i64, tpu.core_type = #tpu.core_type<tc>, window_params = [{transform_indices = @transform_0, window_bounds = array<i64: 8, 16>}, {pipeline_mode = #tpu.pipeline_mode<synchronous>, transform_indices = @transform_1, window_bounds = array<i64: 16, 128>}, {pipeline_mode = #tpu.pipeline_mode<synchronous>, transform_indices = @transform_2, window_bounds = array<i64: 1, 128>}, {pipeline_mode = #tpu.pipeline_mode<synchronous>, transform_indices = @transform_3, window_bounds = array<i64: 128, 64>}, {pipeline_mode = #tpu.pipeline_mode<synchronous>, transform_indices = @transform_4, window_bounds = array<i64: 1, 64>}, {pipeline_mode = #tpu.pipeline_mode<synchronous>, transform_indices = @transform_5, window_bounds = array<i64: 64, 32>}, {pipeline_mode = #tpu.pipeline_mode<synchronous>, transform_indices = @transform_6, window_bounds = array<i64: 1, 32>}, {pipeline_mode = #tpu.pipeline_mode<synchronous>, transform_indices = @transform_7, window_bounds = array<i64: 32, 8>}, {pipeline_mode = #tpu.pipeline_mode<synchronous>, transform_indices = @transform_8, window_bounds = array<i64: 1, 8>}, {transform_indices = @transform_9, window_bounds = array<i64: 8, 8>}]} {
    %c0 = arith.constant 0 : index
    %c0_0 = arith.constant 0 : index
    %0 = vector.load %arg3[%c0, %c0_0] : memref<1x128xf32, #tpu.memory_space<vmem>>, vector<1x128xf32>
    %c0_1 = arith.constant 0 : index
    %c0_2 = arith.constant 0 : index
    %1 = vector.load %arg5[%c0_1, %c0_2] : memref<1x64xf32, #tpu.memory_space<vmem>>, vector<1x64xf32>
    %c0_3 = arith.constant 0 : index
    %c0_4 = arith.constant 0 : index
    %2 = vector.load %arg7[%c0_3, %c0_4] : memref<1x32xf32, #tpu.memory_space<vmem>>, vector<1x32xf32>
    %c0_5 = arith.constant 0 : index
    %c0_6 = arith.constant 0 : index
    %3 = vector.load %arg9[%c0_5, %c0_6] : memref<1x8xf32, #tpu.memory_space<vmem>>, vector<1x8xf32>
    %c0_7 = arith.constant 0 : index
    %c0_8 = arith.constant 0 : index
    %4 = vector.load %arg1[%c0_7, %c0_8] : memref<8x16xf32, #tpu.memory_space<vmem>>, vector<8x16xf32>
    %5 = arith.truncf %4 : vector<8x16xf32> to vector<8x16xbf16>
    %c0_9 = arith.constant 0 : index
    %c0_10 = arith.constant 0 : index
    %6 = vector.load %arg2[%c0_9, %c0_10] : memref<16x128xbf16, #tpu.memory_space<vmem>>, vector<16x128xbf16>
    %cst = arith.constant dense<0.000000e+00> : vector<8x128xf32>
    %7 = tpu.matmul %5, %6, %cst {dimension_numbers = #tpu.dot_dimension_numbers<[1], [0], [0], [1], [0, 0, 1, 1], [], []>} : vector<8x16xbf16>, vector<16x128xbf16>, vector<8x128xf32> -> vector<8x128xf32>
    %8 = vector.broadcast %0 : vector<1x128xf32> to vector<8x128xf32>
    %9 = arith.addf %7, %8 : vector<8x128xf32>
    %cst_11 = arith.constant 0.000000e+00 : f32
    %10 = vector.broadcast %cst_11 : f32 to vector<8x128xf32>
    %11 = arith.maximumf %9, %10 : vector<8x128xf32>
    %12 = arith.truncf %11 : vector<8x128xf32> to vector<8x128xbf16>
    %c0_12 = arith.constant 0 : index
    %c0_13 = arith.constant 0 : index
    %13 = vector.load %arg4[%c0_12, %c0_13] : memref<128x64xbf16, #tpu.memory_space<vmem>>, vector<128x64xbf16>
    %cst_14 = arith.constant dense<0.000000e+00> : vector<8x64xf32>
    %14 = tpu.matmul %12, %13, %cst_14 {dimension_numbers = #tpu.dot_dimension_numbers<[1], [0], [0], [1], [0, 0, 1, 1], [], []>} : vector<8x128xbf16>, vector<128x64xbf16>, vector<8x64xf32> -> vector<8x64xf32>
    %15 = vector.broadcast %1 : vector<1x64xf32> to vector<8x64xf32>
    %16 = arith.addf %14, %15 : vector<8x64xf32>
    %cst_15 = arith.constant 0.000000e+00 : f32
    %17 = vector.broadcast %cst_15 : f32 to vector<8x64xf32>
    %18 = arith.maximumf %16, %17 : vector<8x64xf32>
    %19 = arith.truncf %18 : vector<8x64xf32> to vector<8x64xbf16>
    %c0_16 = arith.constant 0 : index
    %c0_17 = arith.constant 0 : index
    %20 = vector.load %arg6[%c0_16, %c0_17] : memref<64x32xbf16, #tpu.memory_space<vmem>>, vector<64x32xbf16>
    %cst_18 = arith.constant dense<0.000000e+00> : vector<8x32xf32>
    %21 = tpu.matmul %19, %20, %cst_18 {dimension_numbers = #tpu.dot_dimension_numbers<[1], [0], [0], [1], [0, 0, 1, 1], [], []>} : vector<8x64xbf16>, vector<64x32xbf16>, vector<8x32xf32> -> vector<8x32xf32>
    %22 = vector.broadcast %2 : vector<1x32xf32> to vector<8x32xf32>
    %23 = arith.addf %21, %22 : vector<8x32xf32>
    %cst_19 = arith.constant 0.000000e+00 : f32
    %24 = vector.broadcast %cst_19 : f32 to vector<8x32xf32>
    %25 = arith.maximumf %23, %24 : vector<8x32xf32>
    %26 = arith.truncf %25 : vector<8x32xf32> to vector<8x32xbf16>
    %c0_20 = arith.constant 0 : index
    %c0_21 = arith.constant 0 : index
    %27 = vector.load %arg8[%c0_20, %c0_21] : memref<32x8xbf16, #tpu.memory_space<vmem>>, vector<32x8xbf16>
    %cst_22 = arith.constant dense<0.000000e+00> : vector<8x8xf32>
    %28 = tpu.matmul %26, %27, %cst_22 {dimension_numbers = #tpu.dot_dimension_numbers<[1], [0], [0], [1], [0, 0, 1, 1], [], []>} : vector<8x32xbf16>, vector<32x8xbf16>, vector<8x8xf32> -> vector<8x8xf32>
    %29 = vector.broadcast %3 : vector<1x8xf32> to vector<8x8xf32>
    %30 = arith.addf %28, %29 : vector<8x8xf32>
    %cst_23 = arith.constant 0.000000e+00 : f32
    %31 = vector.broadcast %cst_23 : f32 to vector<8x8xf32>
    %32 = arith.subf %31, %30 : vector<8x8xf32>
    %33 = math.exp %32 : vector<8x8xf32>
    %cst_24 = arith.constant 1.000000e+00 : f32
    %34 = vector.broadcast %cst_24 : f32 to vector<8x8xf32>
    %35 = arith.addf %34, %33 : vector<8x8xf32>
    %cst_25 = arith.constant 1.000000e+00 : f32
    %36 = vector.broadcast %cst_25 : f32 to vector<8x8xf32>
    %37 = arith.divf %36, %35 : vector<8x8xf32>
    %c0_26 = arith.constant 0 : index
    %c0_27 = arith.constant 0 : index
    %38 = vector.load %arg10[%c0_26, %c0_27] : memref<8x8xf32, #tpu.memory_space<vmem>>, vector<8x8xf32>
    tpu.vector_store %arg10[%c0_26, %c0_27], %37 {strides = array<i32>} : memref<8x8xf32, #tpu.memory_space<vmem>>, vector<8x8xf32>,
    return
  }
  func.func @transform_0(%arg0: i32) -> (i32, i32) {
    %c0_i32 = arith.constant 0 : i32
    %c0_i32_0 = arith.constant 0 : i32
    return %arg0, %c0_i32 : i32, i32
  }
  func.func @transform_1(%arg0: i32) -> (i32, i32) {
    %c0_i32 = arith.constant 0 : i32
    %c0_i32_0 = arith.constant 0 : i32
    %c0_i32_1 = arith.constant 0 : i32
    return %c0_i32, %c0_i32_0 : i32, i32
  }
  func.func @transform_2(%arg0: i32) -> (i32, i32) {
    %c0_i32 = arith.constant 0 : i32
    %c0_i32_0 = arith.constant 0 : i32
    %c0_i32_1 = arith.constant 0 : i32
    return %c0_i32, %c0_i32_0 : i32, i32
  }
  func.func @transform_3(%arg0: i32) -> (i32, i32) {
    %c0_i32 = arith.constant 0 : i32
    %c0_i32_0 = arith.constant 0 : i32
    %c0_i32_1 = arith.constant 0 : i32
    return %c0_i32, %c0_i32_0 : i32, i32
  }
  func.func @transform_4(%arg0: i32) -> (i32, i32) {
    %c0_i32 = arith.constant 0 : i32
    %c0_i32_0 = arith.constant 0 : i32
    %c0_i32_1 = arith.constant 0 : i32
    return %c0_i32, %c0_i32_0 : i32, i32
  }
  func.func @transform_5(%arg0: i32) -> (i32, i32) {
    %c0_i32 = arith.constant 0 : i32
    %c0_i32_0 = arith.constant 0 : i32
    %c0_i32_1 = arith.constant 0 : i32
    return %c0_i32, %c0_i32_0 : i32, i32
  }
  func.func @transform_6(%arg0: i32) -> (i32, i32) {
    %c0_i32 = arith.constant 0 : i32
    %c0_i32_0 = arith.constant 0 : i32
    %c0_i32_1 = arith.constant 0 : i32
    return %c0_i32, %c0_i32_0 : i32, i32
  }
  func.func @transform_7(%arg0: i32) -> (i32, i32) {
    %c0_i32 = arith.constant 0 : i32
    %c0_i32_0 = arith.constant 0 : i32
    %c0_i32_1 = arith.constant 0 : i32
    return %c0_i32, %c0_i32_0 : i32, i32
  }
  func.func @transform_8(%arg0: i32) -> (i32, i32) {
    %c0_i32 = arith.constant 0 : i32
    %c0_i32_0 = arith.constant 0 : i32
    %c0_i32_1 = arith.constant 0 : i32
    return %c0_i32, %c0_i32_0 : i32, i32
  }
  func.func @transform_9(%arg0: i32) -> (i32, i32) {
    %c0_i32 = arith.constant 0 : i32
    %c0_i32_0 = arith.constant 0 : i32
    return %arg0, %c0_i32 : i32, i32
  }
}

</mosaic_0001>

<bundles_post_ra>
// kernel: tpu_custom_call.1
= control target key start
LH: loop header
LB: loop body
LE: loop exit
PB: predicated region body
PF: predicated region fallthrough
CT: control target
= control target key end

     0   :  { %vm51_vm0 = vcmask 130048   ;;  %s506_s0 = inlined_call_operand.vmem [shape: f32[8,16], index: 0, kind: input, shape index: {}]   ;;  %s507_s1 = inlined_call_operand.vmem [shape: bf16[16,128], index: 1, kind: input, shape index: {}]   ;;  %s508_s2 = inlined_call_operand.vmem [shape: f32[1,128], index: 2, kind: input, shape index: {}]   ;;  %s509_s3 = inlined_call_operand.vmem [shape: bf16[128,64], index: 3, kind: input, shape index: {}]   ;;  %s510_s4 = inlined_call_operand.vmem [shape: f32[1,64], index: 4, kind: input, shape index: {}]   ;;  %s511_s5 = inlined_call_operand.vmem [shape: bf16[64,32], index: 5, kind: input, shape index: {}]   ;;  %s512_s6 = inlined_call_operand.vmem [shape: f32[1,32], index: 6, kind: input, shape index: {}]   ;;  %s513_s7 = inlined_call_operand.vmem [shape: bf16[32,8], index: 7, kind: input, shape index: {}]   ;;  %s514_s8 = inlined_call_operand.vmem [shape: f32[1,8], index: 8, kind: input, shape index: {}]   ;;  %s515_s9 = inlined_call_operand.hbm [shape: f32[8,8], index: 9, kind: output, shape index: {}]  }
   0x1   :  { %v342_v0 = vld [vmem:[%s507_s1] sm:$0xff]  ;;  %v350_v2 = vld [vmem:[%s509_s3 + $0x38] sm:$0xff]  ;;  %v349_v4 = vld [vmem:[%s509_s3 + $0x30] sm:$0xff] }
   0x2   :  { %v38_v1 = vld [vmem:[%s506_s0] sm:$0xff]  ;;  %62 = vmatpush.bf16.msra.mxu0 %v342_v0  ;;  %137 = vmatpush.bf16.msra.mxu1 %v350_v2 }
   0x3   :  { %v39_v3 = vpack.c.bf16 %v38_v1, %v38_v1 }
   0x4   :  { %14 = vsyncpa [#allocation3], 0  ;;  %v348_v5 = vld [vmem:[%s509_s3 + $0x28] sm:$0xff]  ;;  %v347_v6 = vld [vmem:[%s509_s3 + $0x20] sm:$0xff]  ;;  %vm187_vm1 = vcmask 523264   ;;  %vm225_vm2 = vcmask 261120  }
   0x5   :  { %283 = vmatmul.msk.bf16.vlgmr.msra.gmra.mxu0 %vm51_vm0, %v39_v3  ;;  %v346_v7 = vld [vmem:[%s509_s3 + $0x18] sm:$0xff]  ;;  %v345_v8 = vld [vmem:[%s509_s3 + $0x10] sm:$0xff]  ;;  %v344_v9 = vld [vmem:[%s509_s3 + $0x8] sm:$0xff]  ;;  %s270_s21 = sshll.u32 %s515_s9, 4  ;;  %vm261_vm6 = vcmask 64512   ;;  %s271_s21 = int_to_ptr.hbm [resolvable:$true] %s270_s21 }
   0x6   :  { %138 = vmatpush.bf16.msra.mxu1 %v349_v4  ;;  %v343_v10 = vld [vmem:[%s509_s3] sm:$0xff]  ;;  %v354_v11 = vld [vmem:[%s511_s5 + $0x18] sm:$0xff]  ;;  %v353_v12 = vld [vmem:[%s511_s5 + $0x10] sm:$0xff] }
   0x7   :  { %195 = vmatpush.bf16.msra.mxu2 %v354_v11  ;;  %v358_v13 = vld [vmem:[%s508_s2] ss:$0 sm:$0xff]  ;;  %v352_v19 = vld [vmem:[%s511_s5 + $0x8] sm:$0xff] }
   0x8   :  { %v351_v20 = vld [vmem:[%s511_s5] sm:$0xff]  ;;  %v356_v27 = vld [vmem:[%s513_s7 + $0x8] sm:$0xff] }
   0x9   :  { %v359_v21 = vld [vmem:[%s510_s4] ss:$0 sm:$0xff]  ;;  %235 = vmatpush.bf16.msra.mxu3 %v356_v27 }
   0xa   :  { %139 = vmatpush.bf16.msra.mxu1 %v348_v5  ;;  %v355_v28 = vld [vmem:[%s513_s7] sm:$0xff] }
   0xb   :  { %196 = vmatpush.bf16.msra.mxu2 %v353_v12  ;;  %v360_v29 = vld [vmem:[%s512_s6] ss:$0 sm:$0xff]  ;;  %s392_s6 = smov [#allocation2]  }
   0xc   :  { %v361_v35 = vld [vmem:[%s514_s8] ss:$0 sm:$0xff]  ;;  %s268_s7 = sshll.u32 %s392_s6, 4  ;;  %s269_s7 = int_to_ptr.vmem [resolvable:$true] %s268_s7 }
   0xd   :  { %236 = vmatpush.bf16.msra.mxu3 %v355_v28 }
   0xe   :  { %140 = vmatpush.bf16.msra.mxu1 %v347_v6 }
   0xf   :  { %197 = vmatpush.bf16.msra.mxu2 %v352_v19 }
  0x12   :  { %141 = vmatpush.bf16.msra.mxu1 %v346_v7 }
  0x13   :  { %198 = vmatpush.bf16.msra.mxu2 %v351_v20 }
  0x16   :  { %142 = vmatpush.bf16.msra.mxu1 %v345_v8 }
  0x1a   :  { %143 = vmatpush.bf16.msra.mxu1 %v344_v9 }
  0x1e   :  { %144 = vmatpush.bf16.msra.mxu1 %v343_v10 }
  0x82   :  { %v64_v14 = vpop.f32.mrf.mxu0 }
  0x83   :  { %v65_v15 = vadd.f32 %v358_v13, %v64_v14 }
  0x85   :  { %v68_v16 = vmax.f32 %v65_v15, 0.0 }
  0x87   :  { %v69_v17 = vpack.c.bf16 %v68_v16, %v68_v16 }
  0x89   :  { %145 = vmatmul.bf16.vlgmr.msra.gmra.mxu1 %v69_v17 }
  0x8a   :  { %v66_v18 = vpop.f32.mrf.mxu0 }
 0x106   :  { %v146_v22 = vpop.f32.mrf.mxu1 }
 0x107   :  { %v147_v23 = vadd.f32 %v359_v21, %v146_v22 }
 0x109   :  { %v150_v24 = vmax.f32 %v147_v23, 0.0 }
 0x10b   :  { %v151_v25 = vpack.c.bf16 %v150_v24, %v150_v24 }
 0x10d   :  { %332 = vmatmul.msk.bf16.vlgmr.msra.gmra.mxu2 %vm187_vm1, %v151_v25 }
 0x10e   :  { %v148_v26 = vpop.f32.mrf.mxu1 }
 0x190   :  { %v200_v30 = vpop.f32.mrf.mxu2 }
 0x191   :  { %v201_v31 = vadd.f32 %v360_v29, %v200_v30 }
 0x193   :  { %v204_v32 = vmax.f32 %v201_v31, 0.0 }
 0x195   :  { %v205_v33 = vpack.c.bf16 %v204_v32, %v204_v32 }
 0x197   :  { %341 = vmatmul.msk.bf16.vlgmr.msra.gmra.mxu3 %vm225_vm2, %v205_v33 }
 0x198   :  { %v202_v34 = vpop.f32.mrf.mxu2 }
 0x21a   :  { %v238_v36 = vpop.f32.mrf.mxu3 }
 0x21b   :  { %v239_v37 = vadd.f32 %v361_v35, %v238_v36 }
 0x21d   :  { %v242_v38 = vsub.f32 0.0, %v239_v37 }
 0x21f   :  { %v243_v39 = vmul.f32 1.442695, %v242_v38 }
 0x221   :  { %362 = vpow2.f32 %v243_v39 }
 0x222   :  { %v240_v40 = vpop.f32.mrf.mxu3 }
 0x227   :  { %v363_v41 = vpop.eup %362 }
 0x228   :  { %v245_v42 = vadd.f32 1.0, %v363_v41 }
 0x22a   :  { %364 = vrcp.f32 %v245_v42  ;;  %v257_v46 = vand.u32 2147483648, %v245_v42  ;;  %v255_v48 = vand.u32 2147483647, %v245_v42  ;;  %vm251_vm4 = vweird.f32 %v245_v42 }
 0x22c   :  { %v258_v50 = vor.u32 1.1754944e-38, %v257_v46  ;;  %vm256_vm7 = vcmp.eq.f32.partialorder %v255_v48, 8.507059e+37 }
 0x230   :  { %v365_v43 = vpop.eup %364 }
 0x231   :  { %v247_v44 = vmul.f32 %v365_v43, %v245_v42  ;;  %vm252_vm3 = vweird.f32 %v365_v43 }
 0x232   :  { %vm253_vm5 = vmor %vm251_vm4, %vm252_vm3 }
 0x233   :  { %v248_v45 = vsub.f32 1.0, %v247_v44 }
 0x235   :  { %v249_v47 = vmul.f32 %v365_v43, %v248_v45 }
 0x237   :  { %v250_v49 = vadd.f32 %v365_v43, %v249_v47 }
 0x239   :  { %v254_v51 = vsel %vm253_vm5, %v365_v43, %v250_v49 }
 0x23a   :  { %v259_v52 = vsel %vm256_vm7, %v258_v50, %v254_v51 }
 0x23b   :  { %262 = vst.msk [vmem:[#allocation2] sm:$0xff] %vm261_vm6, %v259_v52 }
 0x23c   :  { %273 = dma.vmem_to_hbm [thread:$0]  %s269_s7, 128, %s271_s21, [#allocation3]  }
 0x23d   :  { %390 = dma.done.wait [#allocation3], 128  }
 0x23e   :  { %391 = vsyncadd [#allocation3], 4294967168 }
 0x23f   :  { %278 = vsyncpa [#allocation3], 1 }

// kernel: tpu_custom_call.1
= control target key start
LH: loop header
LB: loop body
LE: loop exit
PB: predicated region body
PF: predicated region fallthrough
CT: control target
= control target key end

     0   :  { %vm51_vm0 = vcmask 130048   ;;  %s506_s0 = inlined_call_operand.vmem [shape: f32[8,16], index: 0, kind: input, shape index: {}]   ;;  %s507_s1 = inlined_call_operand.vmem [shape: bf16[16,128], index: 1, kind: input, shape index: {}]   ;;  %s508_s2 = inlined_call_operand.vmem [shape: f32[1,128], index: 2, kind: input, shape index: {}]   ;;  %s509_s3 = inlined_call_operand.vmem [shape: bf16[128,64], index: 3, kind: input, shape index: {}]   ;;  %s510_s4 = inlined_call_operand.vmem [shape: f32[1,64], index: 4, kind: input, shape index: {}]   ;;  %s511_s5 = inlined_call_operand.vmem [shape: bf16[64,32], index: 5, kind: input, shape index: {}]   ;;  %s512_s6 = inlined_call_operand.vmem [shape: f32[1,32], index: 6, kind: input, shape index: {}]   ;;  %s513_s7 = inlined_call_operand.vmem [shape: bf16[32,8], index: 7, kind: input, shape index: {}]   ;;  %s514_s8 = inlined_call_operand.vmem [shape: f32[1,8], index: 8, kind: input, shape index: {}]   ;;  %s515_s9 = inlined_call_operand.hbm [shape: f32[8,8], index: 9, kind: output, shape index: {}]  }
   0x1   :  { %v342_v0 = vld [vmem:[%s507_s1] sm:$0xff]  ;;  %v350_v2 = vld [vmem:[%s509_s3 + $0x38] sm:$0xff]  ;;  %v349_v4 = vld [vmem:[%s509_s3 + $0x30] sm:$0xff] }
   0x2   :  { %v38_v1 = vld [vmem:[%s506_s0] sm:$0xff]  ;;  %62 = vmatpush.bf16.msra.mxu0 %v342_v0  ;;  %137 = vmatpush.bf16.msra.mxu1 %v350_v2 }
   0x3   :  { %v39_v3 = vpack.c.bf16 %v38_v1, %v38_v1 }
   0x4   :  { %14 = vsyncpa [#allocation3], 0  ;;  %v348_v5 = vld [vmem:[%s509_s3 + $0x28] sm:$0xff]  ;;  %v347_v6 = vld [vmem:[%s509_s3 + $0x20] sm:$0xff]  ;;  %vm187_vm1 = vcmask 523264   ;;  %vm225_vm2 = vcmask 261120  }
   0x5   :  { %283 = vmatmul.msk.bf16.vlgmr.msra.gmra.mxu0 %vm51_vm0, %v39_v3  ;;  %v346_v7 = vld [vmem:[%s509_s3 + $0x18] sm:$0xff]  ;;  %v345_v8 = vld [vmem:[%s509_s3 + $0x10] sm:$0xff]  ;;  %v344_v9 = vld [vmem:[%s509_s3 + $0x8] sm:$0xff]  ;;  %s270_s21 = sshll.u32 %s515_s9, 4  ;;  %vm261_vm6 = vcmask 64512   ;;  %s271_s21 = int_to_ptr.hbm [resolvable:$true] %s270_s21 }
   0x6   :  { %138 = vmatpush.bf16.msra.mxu1 %v349_v4  ;;  %v343_v10 = vld [vmem:[%s509_s3] sm:$0xff]  ;;  %v354_v11 = vld [vmem:[%s511_s5 + $0x18] sm:$0xff]  ;;  %v353_v12 = vld [vmem:[%s511_s5 + $0x10] sm:$0xff] }
   0x7   :  { %195 = vmatpush.bf16.msra.mxu2 %v354_v11  ;;  %v358_v13 = vld [vmem:[%s508_s2] ss:$0 sm:$0xff]  ;;  %v352_v19 = vld [vmem:[%s511_s5 + $0x8] sm:$0xff] }
   0x8   :  { %v351_v20 = vld [vmem:[%s511_s5] sm:$0xff]  ;;  %v356_v27 = vld [vmem:[%s513_s7 + $0x8] sm:$0xff] }
   0x9   :  { %v359_v21 = vld [vmem:[%s510_s4] ss:$0 sm:$0xff]  ;;  %235 = vmatpush.bf16.msra.mxu3 %v356_v27 }
   0xa   :  { %139 = vmatpush.bf16.msra.mxu1 %v348_v5  ;;  %v355_v28 = vld [vmem:[%s513_s7] sm:$0xff] }
   0xb   :  { %196 = vmatpush.bf16.msra.mxu2 %v353_v12  ;;  %v360_v29 = vld [vmem:[%s512_s6] ss:$0 sm:$0xff]  ;;  %s392_s6 = smov [#allocation2]  }
   0xc   :  { %v361_v35 = vld [vmem:[%s514_s8] ss:$0 sm:$0xff]  ;;  %s268_s7 = sshll.u32 %s392_s6, 4  ;;  %s269_s7 = int_to_ptr.vmem [resolvable:$true] %s268_s7 }
   0xd   :  { %236 = vmatpush.bf16.msra.mxu3 %v355_v28 }
   0xe   :  { %140 = vmatpush.bf16.msra.mxu1 %v347_v6 }
   0xf   :  { %197 = vmatpush.bf16.msra.mxu2 %v352_v19 }
  0x12   :  { %141 = vmatpush.bf16.msra.mxu1 %v346_v7 }
  0x13   :  { %198 = vmatpush.bf16.msra.mxu2 %v351_v20 }
  0x16   :  { %142 = vmatpush.bf16.msra.mxu1 %v345_v8 }
  0x1a   :  { %143 = vmatpush.bf16.msra.mxu1 %v344_v9 }
  0x1e   :  { %144 = vmatpush.bf16.msra.mxu1 %v343_v10 }
  0x82   :  { %v64_v14 = vpop.f32.mrf.mxu0 }
  0x83   :  { %v65_v15 = vadd.f32 %v358_v13, %v64_v14 }
  0x85   :  { %v68_v16 = vmax.f32 %v65_v15, 0.0 }
  0x87   :  { %v69_v17 = vpack.c.bf16 %v68_v16, %v68_v16 }
  0x89   :  { %145 = vmatmul.bf16.vlgmr.msra.gmra.mxu1 %v69_v17 }
  0x8a   :  { %v66_v18 = vpop.f32.mrf.mxu0 }
 0x106   :  { %v146_v22 = vpop.f32.mrf.mxu1 }
 0x107   :  { %v147_v23 = vadd.f32 %v359_v21, %v146_v22 }
 0x109   :  { %v150_v24 = vmax.f32 %v147_v23, 0.0 }
 0x10b   :  { %v151_v25 = vpack.c.bf16 %v150_v24, %v150_v24 }
 0x10d   :  { %332 = vmatmul.msk.bf16.vlgmr.msra.gmra.mxu2 %vm187_vm1, %v151_v25 }
 0x10e   :  { %v148_v26 = vpop.f32.mrf.mxu1 }
 0x190   :  { %v200_v30 = vpop.f32.mrf.mxu2 }
 0x191   :  { %v201_v31 = vadd.f32 %v360_v29, %v200_v30 }
 0x193   :  { %v204_v32 = vmax.f32 %v201_v31, 0.0 }
 0x195   :  { %v205_v33 = vpack.c.bf16 %v204_v32, %v204_v32 }
 0x197   :  { %341 = vmatmul.msk.bf16.vlgmr.msra.gmra.mxu3 %vm225_vm2, %v205_v33 }
 0x198   :  { %v202_v34 = vpop.f32.mrf.mxu2 }
 0x21a   :  { %v238_v36 = vpop.f32.mrf.mxu3 }
 0x21b   :  { %v239_v37 = vadd.f32 %v361_v35, %v238_v36 }
 0x21d   :  { %v242_v38 = vsub.f32 0.0, %v239_v37 }
 0x21f   :  { %v243_v39 = vmul.f32 1.442695, %v242_v38 }
 0x221   :  { %362 = vpow2.f32 %v243_v39 }
 0x222   :  { %v240_v40 = vpop.f32.mrf.mxu3 }
 0x227   :  { %v363_v41 = vpop.eup %362 }
 0x228   :  { %v245_v42 = vadd.f32 1.0, %v363_v41 }
 0x22a   :  { %364 = vrcp.f32 %v245_v42  ;;  %v257_v46 = vand.u32 2147483648, %v245_v42  ;;  %v255_v48 = vand.u32 2147483647, %v245_v42  ;;  %vm251_vm4 = vweird.f32 %v245_v42 }
 0x22c   :  { %v258_v50 = vor.u32 1.1754944e-38, %v257_v46  ;;  %vm256_vm7 = vcmp.eq.f32.partialorder %v255_v48, 8.507059e+37 }
 0x230   :  { %v365_v43 = vpop.eup %364 }
 0x231   :  { %v247_v44 = vmul.f32 %v365_v43, %v245_v42  ;;  %vm252_vm3 = vweird.f32 %v365_v43 }
 0x232   :  { %vm253_vm5 = vmor %vm251_vm4, %vm252_vm3 }
 0x233   :  { %v248_v45 = vsub.f32 1.0, %v247_v44 }
 0x235   :  { %v249_v47 = vmul.f32 %v365_v43, %v248_v45 }
 0x237   :  { %v250_v49 = vadd.f32 %v365_v43, %v249_v47 }
 0x239   :  { %v254_v51 = vsel %vm253_vm5, %v365_v43, %v250_v49 }
 0x23a   :  { %v259_v52 = vsel %vm256_vm7, %v258_v50, %v254_v51 }
 0x23b   :  { %262 = vst.msk [vmem:[#allocation2] sm:$0xff] %vm261_vm6, %v259_v52 }
 0x23c   :  { %273 = dma.vmem_to_hbm [thread:$0]  %s269_s7, 128, %s271_s21, [#allocation3]  }
 0x23d   :  { %390 = dma.done.wait [#allocation3], 128  }
 0x23e   :  { %391 = vsyncadd [#allocation3], 4294967168 }
 0x23f   :  { %278 = vsyncpa [#allocation3], 1 }

</bundles_post_ra>
